<compile_context>
chip_gen: v7x
topology: tpu7x:2x2x1
jax: 0.10.0
libtpu: 0.0.40
codegen_flags: <defaults>
</compile_context>

<pallas_src>
import jax
import jax.numpy as jnp
from jax.experimental import pallas as pl
from jax.experimental.pallas import tpu as pltpu


def join_fc_kernel(x_ref, m_ref, b_ref, w_ref, bias_ref, o_ref):
    # Static feature splits (Python ints at trace time).
    dx = x_ref.shape[1]
    dm = m_ref.shape[1]

    # "Concat + Linear" expressed as three sliced matmuls. dx (512) and
    # dx+dm (640) are multiples of the sublane tile, so the weight row
    # slices are free views. bf16 operands, f32 accumulation on the MXU.
    acc = jnp.dot(x_ref[...], w_ref[:dx, :],
                  preferred_element_type=jnp.float32)
    acc += jnp.dot(m_ref[...], w_ref[dx:dx + dm, :],
                   preferred_element_type=jnp.float32)
    acc += jnp.dot(b_ref[...], w_ref[dx + dm:, :],
                   preferred_element_type=jnp.float32)

    # Bias + ReLU in f32, lane-dense (H = 256) output store.
    acc = acc + bias_ref[...]
    o_ref[...] = jnp.maximum(acc, 0.0).astype(o_ref.dtype)


def join_forward(x, m, b, w, bias):
    """x:(B,Dx) m:(B,Dm) b:(B,Db) w:(Dx+Dm+Db,H) bias:(1,H) -> (B,H) f32."""
    B = x.shape[0]
    H = w.shape[1]
    D = x.shape[1] + m.shape[1] + b.shape[1]
    assert w.shape[0] == D

    # Feed the MXU bf16 operands (halves the dominant weight DMA); bias and
    # the accumulator / output stay f32.
    x_bf = x.astype(jnp.bfloat16)
    m_bf = m.astype(jnp.bfloat16)
    b_bf = b.astype(jnp.bfloat16)
    w_bf = w.astype(jnp.bfloat16)
    bias_f32 = bias.astype(jnp.float32)

    vmem = pl.BlockSpec(memory_space=pltpu.MemorySpace.VMEM)
    return pl.pallas_call(
        join_fc_kernel,
        out_shape=jax.ShapeDtypeStruct((B, H), jnp.float32),
        in_specs=[vmem, vmem, vmem, vmem, vmem],
        out_specs=vmem,
    )(x_bf, m_bf, b_bf, w_bf, bias_f32)


def reference_bf16(x, m, b, w, bias):
    # Matches the kernel's numerics: bf16 operands, f32 accumulation.
    j = jnp.concatenate([x, m, b], axis=1).astype(jnp.bfloat16)
    acc = jnp.dot(j, w.astype(jnp.bfloat16),
                  preferred_element_type=jnp.float32)
    return jnp.maximum(acc + bias, 0.0)


def reference_f32(x, m, b, w, bias):
    j = jnp.concatenate([x, m, b], axis=1)
    return jnp.maximum(j @ w + bias, 0.0)


if __name__ == "__main__":
    key = jax.random.PRNGKey(0)
    kx, km, kb, kw, kbias = jax.random.split(key, 5)

    # Small shapes consistent with CILRS Join: image features x, measurement
    # features m, bbox features b, concatenated on dim 1.
    B = 8          # batch
    Dx = 512       # image-branch features
    Dm = 128       # measurement-branch features
    Db = 128       # bbox-branch features
    H = 256        # after_process FC hidden size

    x = jax.random.normal(kx, (B, Dx), dtype=jnp.float32)
    m = jax.random.normal(km, (B, Dm), dtype=jnp.float32)
    b = jax.random.normal(kb, (B, Db), dtype=jnp.float32)

    # Deterministic synthetic parameters for the after_process Linear layer.
    D = Dx + Dm + Db
    w = jax.random.normal(kw, (D, H), dtype=jnp.float32) * 0.02
    bias = jax.random.normal(kbias, (1, H), dtype=jnp.float32) * 0.01
    # TODO(synk): Dropout inside after_process is identity at inference; not modeled.

    out = join_forward(x, m, b, w, bias)
    out = jax.block_until_ready(out)
    assert out.shape == (B, H)

    # Tight check against the bf16-matched reference (same operand precision).
    ref_bf = reference_bf16(x, m, b, w, bias)
    assert jnp.allclose(out, ref_bf, atol=1e-2, rtol=1e-2)

    # Looser sanity check against the full-f32 reference (bf16 operand quantization).
    ref_f32 = reference_f32(x, m, b, w, bias)
    assert jnp.allclose(out, ref_f32, atol=5e-2, rtol=5e-2)

    print("KERNEL_OK")
</pallas_src>

<mosaic_0001>
module attributes {stable_mosaic.version = 11 : i64} {
  func.func @join_fc_kernel(%arg0: memref<8x512xbf16, #tpu.memory_space<vmem>>, %arg1: memref<8x128xbf16, #tpu.memory_space<vmem>>, %arg2: memref<8x128xbf16, #tpu.memory_space<vmem>>, %arg3: memref<768x256xbf16, #tpu.memory_space<vmem>>, %arg4: memref<1x256xf32, #tpu.memory_space<vmem>>, %arg5: memref<8x256xf32, #tpu.memory_space<vmem>>) attributes {dimension_semantics = [], scalar_prefetch = 0 : i64, scratch_operands = 0 : i64, tpu.core_type = #tpu.core_type<tc>} {
    %c0 = arith.constant 0 : index
    %c0_0 = arith.constant 0 : index
    %0 = vector.load %arg0[%c0, %c0_0] : memref<8x512xbf16, #tpu.memory_space<vmem>>, vector<8x512xbf16>
    %c0_1 = arith.constant 0 : index
    %c0_2 = arith.constant 0 : index
    %1 = vector.load %arg3[%c0_1, %c0_2] : memref<768x256xbf16, #tpu.memory_space<vmem>>, vector<512x256xbf16>
    %cst = arith.constant dense<0.000000e+00> : vector<8x256xf32>
    %2 = tpu.matmul %0, %1, %cst {dimension_numbers = #tpu.dot_dimension_numbers<[1], [0], [0], [1], [0, 0, 1, 1], [], []>} : vector<8x512xbf16>, vector<512x256xbf16>, vector<8x256xf32> -> vector<8x256xf32>
    %c0_3 = arith.constant 0 : index
    %c0_4 = arith.constant 0 : index
    %3 = vector.load %arg1[%c0_3, %c0_4] : memref<8x128xbf16, #tpu.memory_space<vmem>>, vector<8x128xbf16>
    %c512 = arith.constant 512 : index
    %c0_5 = arith.constant 0 : index
    %4 = vector.load %arg3[%c512, %c0_5] : memref<768x256xbf16, #tpu.memory_space<vmem>>, vector<128x256xbf16>
    %cst_6 = arith.constant dense<0.000000e+00> : vector<8x256xf32>
    %5 = tpu.matmul %3, %4, %cst_6 {dimension_numbers = #tpu.dot_dimension_numbers<[1], [0], [0], [1], [0, 0, 1, 1], [], []>} : vector<8x128xbf16>, vector<128x256xbf16>, vector<8x256xf32> -> vector<8x256xf32>
    %6 = arith.addf %2, %5 : vector<8x256xf32>
    %c0_7 = arith.constant 0 : index
    %c0_8 = arith.constant 0 : index
    %7 = vector.load %arg2[%c0_7, %c0_8] : memref<8x128xbf16, #tpu.memory_space<vmem>>, vector<8x128xbf16>
    %c640 = arith.constant 640 : index
    %c0_9 = arith.constant 0 : index
    %8 = vector.load %arg3[%c640, %c0_9] : memref<768x256xbf16, #tpu.memory_space<vmem>>, vector<128x256xbf16>
    %cst_10 = arith.constant dense<0.000000e+00> : vector<8x256xf32>
    %9 = tpu.matmul %7, %8, %cst_10 {dimension_numbers = #tpu.dot_dimension_numbers<[1], [0], [0], [1], [0, 0, 1, 1], [], []>} : vector<8x128xbf16>, vector<128x256xbf16>, vector<8x256xf32> -> vector<8x256xf32>
    %10 = arith.addf %6, %9 : vector<8x256xf32>
    %c0_11 = arith.constant 0 : index
    %c0_12 = arith.constant 0 : index
    %11 = vector.load %arg4[%c0_11, %c0_12] : memref<1x256xf32, #tpu.memory_space<vmem>>, vector<1x256xf32>
    %12 = vector.broadcast %11 : vector<1x256xf32> to vector<8x256xf32>
    %13 = arith.addf %10, %12 : vector<8x256xf32>
    %cst_13 = arith.constant 0.000000e+00 : f32
    %14 = vector.broadcast %cst_13 : f32 to vector<8x256xf32>
    %15 = arith.maximumf %13, %14 : vector<8x256xf32>
    %c0_14 = arith.constant 0 : index
    %c0_15 = arith.constant 0 : index
    %16 = vector.load %arg5[%c0_14, %c0_15] : memref<8x256xf32, #tpu.memory_space<vmem>>, vector<8x256xf32>
    tpu.vector_store %arg5[%c0_14, %c0_15], %15 {strides = array<i32>} : memref<8x256xf32, #tpu.memory_space<vmem>>, vector<8x256xf32>,
    return
  }
}

</mosaic_0001>

<bundles_post_ra>
// kernel: tpu_custom_call.1
= control target key start
LH: loop header
LB: loop body
LE: loop exit
PB: predicated region body
PF: predicated region fallthrough
CT: control target
= control target key end

     0   :  { %10 = vsyncpa [#allocation3], 0  ;;  %s1301_s0 = inlined_call_operand.hbm [shape: bf16[8,512], index: 0, kind: input, shape index: {}]   ;;  %s1302_s1 = inlined_call_operand.hbm [shape: bf16[8,128], index: 1, kind: input, shape index: {}]   ;;  %s1303_s2 = inlined_call_operand.vmem [shape: bf16[8,128], index: 2, kind: input, shape index: {}]   ;;  %s1304_s3 = inlined_call_operand.hbm [shape: bf16[768,256], index: 3, kind: input, shape index: {}]   ;;  %s1305_s4 = inlined_call_operand.vmem [shape: f32[1,256], index: 4, kind: input, shape index: {}]   ;;  %s1306_s5 = inlined_call_operand.hbm [shape: f32[8,256], index: 5, kind: output, shape index: {}]  }
   0x1   :  { %11 = vsyncpa [#allocation6], 0 }
   0x2   :  { %12 = vsyncpa [#allocation4], 0  ;;  %s1202_s18 = smov [#allocation5]   ;;  %s1203_s20 = smov [#allocation2]  }
   0x3   :  { %s29_s19 = sshll.u32 %s1202_s18, 4  ;;  %s19_s21 = sshll.u32 %s1203_s20, 4  ;;  %s30_s19 = int_to_ptr.vmem [resolvable:$true] %s29_s19  ;;  %s20_s21 = int_to_ptr.vmem [resolvable:$true] %s19_s21 }
   0x4   :  { %s1108_s24 = scalar_lea.hbm %s1302_s1, 64 }
   0x5   :  { %p1109_p0 = scmp.ne.s32.totalorder %s1302_s1, %s1108_s24  ;;  %p1112_p1 = scmp.lt.u32.totalorder %s1108_s24, %s1302_s1 }
   0x7   :  { %p1114_p2 = pnand %p1112_p1, %p1109_p0 }
   0x9   :  { %1117 = shalt.err (!%p1114_p2)
}
   0xa   :  { %s1118_s29 = scalar_lea.vmem %s30_s19, 64  ;;  %p1123_p4 = scmp.lt.s32.totalorder %s30_s19, %s30_s19 }
   0xb   :  { %p1119_p3 = scmp.ne.s32.totalorder %s30_s19, %s1118_s29  ;;  %p1124_p5 = scmp.lt.s32.totalorder %s1118_s29, %s1118_s29 }
   0xd   :  { %p1125_p6 = por %p1124_p5, %p1123_p4 }
   0xf   :  { %p1126_p7 = pnand %p1125_p6, %p1119_p3 }
  0x11   :  { %1129 = shalt.err (!%p1126_p7)
}
  0x12   :  { %32 = dma.hbm_to_vmem [thread:$0]  %s1302_s1, 64, %s30_s19, [#allocation6]  }
  0x13   :  { %s1130_s9 = scalar_lea.hbm %s1301_s0, 256 }
  0x14   :  { %p1131_p8 = scmp.ne.s32.totalorder %s1301_s0, %s1130_s9  ;;  %p1134_p9 = scmp.lt.u32.totalorder %s1130_s9, %s1301_s0 }
  0x16   :  { %p1136_p10 = pnand %p1134_p9, %p1131_p8 }
  0x18   :  { %1139 = shalt.err (!%p1136_p10)
}
  0x19   :  { %s1140_s14 = scalar_lea.vmem %s20_s21, 256  ;;  %p1145_p12 = scmp.lt.s32.totalorder %s20_s21, %s20_s21 }
  0x1a   :  { %p1141_p11 = scmp.ne.s32.totalorder %s20_s21, %s1140_s14  ;;  %p1146_p13 = scmp.lt.s32.totalorder %s1140_s14, %s1140_s14 }
  0x1c   :  { %p1147_p0 = por %p1146_p13, %p1145_p12 }
  0x1e   :  { %p1148_p1 = pnand %p1147_p0, %p1141_p11 }
  0x20   :  { %1151 = shalt.err (!%p1148_p1)
}
  0x21   :  { %22 = dma.hbm_to_vmem [thread:$0]  %s1301_s0, 256, %s20_s21, [#allocation3]  }
  0x22   :  { %s1204_s16 = smov [#allocation7]   ;;  %s1152_s20 = scalar_lea.hbm %s1304_s3, 12288 }
  0x23   :  { %s40_s17 = sshll.u32 %s1204_s16, 4  ;;  %p1153_p2 = scmp.ne.s32.totalorder %s1304_s3, %s1152_s20  ;;  %s41_s17 = int_to_ptr.vmem [resolvable:$true] %s40_s17 }
  0x24   :  { %p1156_p3 = scmp.lt.u32.totalorder %s1152_s20, %s1304_s3 }
  0x26   :  { %p1158_p4 = pnand %p1156_p3, %p1153_p2 }
  0x28   :  { %1161 = shalt.err (!%p1158_p4)
}
  0x29   :  { %s1162_s26 = scalar_lea.vmem %s41_s17, 12288  ;;  %p1167_p6 = scmp.lt.s32.totalorder %s41_s17, %s41_s17 }
  0x2a   :  { %p1163_p5 = scmp.ne.s32.totalorder %s41_s17, %s1162_s26  ;;  %p1168_p7 = scmp.lt.s32.totalorder %s1162_s26, %s1162_s26 }
  0x2c   :  { %p1169_p8 = por %p1168_p7, %p1167_p6 }
  0x2e   :  { %p1170_p9 = pnand %p1169_p8, %p1163_p5 }
  0x30   :  { %1173 = shalt.err (!%p1170_p9)
}
  0x31   :  { %s1205_s0 = smov 128   ;;  %s1206_s21 = smov 8  }
  0x32   :  { %46 = dma.hbm_to_vmem [thread:$0]  %s1304_s3, 12288, %s41_s17, [#allocation6], %s1205_s0, %s1205_s0, %s1206_s21  }
  0x33   :  { %1196 = dma.done.wait [#allocation3], 256  }
  0x34   :  { %1197 = vsyncadd [#allocation3], 4294967040 }
  0x35   :  { %1198 = dma.done.wait [#allocation6], 12352  }
  0x36   :  { %1199 = vsyncadd [#allocation6], 4294954944  ;;  %v1207_v0 = vmov 0   ;;  %v960_v1 = vld [vmem:[#allocation7 + $0x204] ss:$8 sps:$4 sm:$0xff]  }
  0x37   :  { %254 = vmatprep.mubr.bf16.mxu0 %v1207_v0  ;;  %v962_v2 = vld [vmem:[#allocation7 + $0x4] ss:$8 sps:$4 sm:$0xff]   ;;  %222 = vmatprep.subr.bf16.mxu0 %v960_v1  ;;  %v964_v3 = vld [vmem:[#allocation7 + $0x200] ss:$8 sps:$4 sm:$0xff]   ;;  %v966_v5 = vld [vmem:[#allocation7 + $0x214] ss:$8 sps:$4 sm:$0xff]  }
  0x38   :  { %v965_v4 = vld [vmem:[#allocation7] ss:$8 sps:$4 sm:$0xff]   ;;  %597 = vmatprep.subr.bf16.mxu1 %v962_v2  ;;  %223 = vmatpush1.bf16.msra.mxu0 %v964_v3  ;;  %v968_v6 = vld [vmem:[#allocation7 + $0x14] ss:$8 sps:$4 sm:$0xff]   ;;  %v970_v7 = vld [vmem:[#allocation7 + $0x210] ss:$8 sps:$4 sm:$0xff]  }
  0x39   :  { %598 = vmatpush1.bf16.msra.mxu1 %v965_v4  ;;  %224 = vmatprep.subr.bf16.mxu0 %v966_v5  ;;  %v971_v8 = vld [vmem:[#allocation7 + $0x10] ss:$8 sps:$4 sm:$0xff]   ;;  %v972_v9 = vld [vmem:[#allocation7 + $0x224] ss:$8 sps:$4 sm:$0xff]   ;;  %v976_v11 = vld [vmem:[#allocation7 + $0x220] ss:$8 sps:$4 sm:$0xff]  }
  0x3a   :  { %599 = vmatprep.subr.bf16.mxu1 %v968_v6  ;;  %v974_v10 = vld [vmem:[#allocation7 + $0x24] ss:$8 sps:$4 sm:$0xff]   ;;  %v977_v12 = vld [vmem:[#allocation7 + $0x20] ss:$8 sps:$4 sm:$0xff]   ;;  %v978_v13 = vld [vmem:[#allocation7 + $0x234] ss:$8 sps:$4 sm:$0xff]  }
  0x3b   :  { %v980_v14 = vld [vmem:[#allocation7 + $0x34] ss:$8 sps:$4 sm:$0xff]   ;;  %v982_v15 = vld [vmem:[#allocation7 + $0x230] ss:$8 sps:$4 sm:$0xff]   ;;  %v984_v17 = vld [vmem:[#allocation7 + $0x244] ss:$8 sps:$4 sm:$0xff]  }
  0x3c   :  { %225 = vmatpush1.bf16.msra.mxu0 %v970_v7  ;;  %v983_v16 = vld [vmem:[#allocation7 + $0x30] ss:$8 sps:$4 sm:$0xff]   ;;  %v986_v18 = vld [vmem:[#allocation7 + $0x44] ss:$8 sps:$4 sm:$0xff]   ;;  %v988_v19 = vld [vmem:[#allocation7 + $0x240] ss:$8 sps:$4 sm:$0xff]  }
  0x3d   :  { %600 = vmatpush1.bf16.msra.mxu1 %v971_v8  ;;  %226 = vmatprep.subr.bf16.mxu0 %v972_v9  ;;  %v989_v20 = vld [vmem:[#allocation7 + $0x40] ss:$8 sps:$4 sm:$0xff]   ;;  %v990_v21 = vld [vmem:[#allocation7 + $0x254] ss:$8 sps:$4 sm:$0xff]   ;;  %v994_v23 = vld [vmem:[#allocation7 + $0x250] ss:$8 sps:$4 sm:$0xff]  }
  0x3e   :  { %601 = vmatprep.subr.bf16.mxu1 %v974_v10  ;;  %v992_v22 = vld [vmem:[#allocation7 + $0x54] ss:$8 sps:$4 sm:$0xff]   ;;  %v995_v24 = vld [vmem:[#allocation7 + $0x50] ss:$8 sps:$4 sm:$0xff]   ;;  %v996_v25 = vld [vmem:[#allocation7 + $0x264] ss:$8 sps:$4 sm:$0xff]  }
  0x3f   :  { %v998_v26 = vld [vmem:[#allocation7 + $0x64] ss:$8 sps:$4 sm:$0xff]   ;;  %v1000_v27 = vld [vmem:[#allocation7 + $0x260] ss:$8 sps:$4 sm:$0xff]   ;;  %v1002_v29 = vld [vmem:[#allocation7 + $0x274] ss:$8 sps:$4 sm:$0xff]  }
  0x40   :  { %227 = vmatpush1.bf16.msra.mxu0 %v976_v11  ;;  %v1001_v28 = vld [vmem:[#allocation7 + $0x60] ss:$8 sps:$4 sm:$0xff]   ;;  %v1004_v30 = vld [vmem:[#allocation7 + $0x74] ss:$8 sps:$4 sm:$0xff]   ;;  %v1006_v31 = vld [vmem:[#allocation7 + $0x270] ss:$8 sps:$4 sm:$0xff]  }
  0x41   :  { %602 = vmatpush1.bf16.msra.mxu1 %v977_v12  ;;  %228 = vmatprep.subr.bf16.mxu0 %v978_v13  ;;  %v1007_v32 = vld [vmem:[#allocation7 + $0x70] ss:$8 sps:$4 sm:$0xff]   ;;  %v1008_v33 = vld [vmem:[#allocation7 + $0x84] ss:$8 sps:$4 sm:$0xff]   ;;  %v125_v35 = vld [vmem:[#allocation5] sm:$0xf] }
  0x42   :  { %603 = vmatprep.subr.bf16.mxu1 %v980_v14  ;;  %v1012_v34 = vld [vmem:[#allocation7 + $0x104] ss:$8 sps:$4 sm:$0xff]   ;;  %v1010_v36 = vld [vmem:[#allocation7 + $0x100] ss:$8 sps:$4 sm:$0xff]   ;;  %v1014_v38 = vld [vmem:[#allocation7 + $0x94] ss:$8 sps:$4 sm:$0xff]  }
  0x43   :  { %v1013_v37 = vld [vmem:[#allocation7 + $0x80] ss:$8 sps:$4 sm:$0xff]   ;;  %v1018_v39 = vld [vmem:[#allocation7 + $0x114] ss:$8 sps:$4 sm:$0xff]   ;;  %v1016_v40 = vld [vmem:[#allocation7 + $0x110] ss:$8 sps:$4 sm:$0xff]  }
  0x44   :  { %229 = vmatpush1.bf16.msra.mxu0 %v982_v15  ;;  %v1019_v41 = vld [vmem:[#allocation7 + $0x90] ss:$8 sps:$4 sm:$0xff]   ;;  %v1020_v42 = vld [vmem:[#allocation7 + $0xa4] ss:$8 sps:$4 sm:$0xff]   ;;  %v1022_v44 = vld [vmem:[#allocation7 + $0x120] ss:$8 sps:$4 sm:$0xff]  }
  0x45   :  { %604 = vmatpush1.bf16.msra.mxu1 %v983_v16  ;;  %230 = vmatprep.subr.bf16.mxu0 %v984_v17  ;;  %v1024_v43 = vld [vmem:[#allocation7 + $0x124] ss:$8 sps:$4 sm:$0xff]   ;;  %v1025_v45 = vld [vmem:[#allocation7 + $0xa0] ss:$8 sps:$4 sm:$0xff]   ;;  %v1026_v46 = vld [vmem:[#allocation7 + $0xb4] ss:$8 sps:$4 sm:$0xff]  }
  0x46   :  { %605 = vmatprep.subr.bf16.mxu1 %v986_v18  ;;  %v1030_v47 = vld [vmem:[#allocation7 + $0x134] ss:$8 sps:$4 sm:$0xff]   ;;  %v59_v48 = vld [vmem:[#allocation2] sm:$0xff]  ;;  %v1034_v54 = vld [vmem:[#allocation7 + $0x140] ss:$8 sps:$4 sm:$0xff]  }
  0x47   :  { %v1028_v49 = vld [vmem:[#allocation7 + $0x130] ss:$8 sps:$4 sm:$0xff]   ;;  %v870_v51 = vcombine.high %v59_v48, %v59_v48  ;;  %v1032_v52 = vld [vmem:[#allocation7 + $0xc4] ss:$8 sps:$4 sm:$0xff]   ;;  %v1037_v55 = vld [vmem:[#allocation7 + $0xc0] ss:$8 sps:$4 sm:$0xff]   ;;  %v869_v7 = vcombine.low %v59_v48, %v59_v48 }
  0x48   :  { %231 = vmatpush1.bf16.msra.mxu0 %v988_v19  ;;  %v1031_v50 = vld [vmem:[#allocation7 + $0xb0] ss:$8 sps:$4 sm:$0xff]   ;;  %v1036_v53 = vld [vmem:[#allocation7 + $0x144] ss:$8 sps:$4 sm:$0xff]   ;;  %v1038_v56 = vld [vmem:[#allocation7 + $0xd4] ss:$8 sps:$4 sm:$0xff]  }
  0x49   :  { %606 = vmatpush1.bf16.msra.mxu1 %v989_v20  ;;  %232 = vmatprep.subr.bf16.mxu0 %v990_v21  ;;  %v1042_v57 = vld [vmem:[#allocation7 + $0x154] ss:$8 sps:$4 sm:$0xff]   ;;  %v1040_v58 = vld [vmem:[#allocation7 + $0x150] ss:$8 sps:$4 sm:$0xff]   ;;  %v1044_v60 = vld [vmem:[#allocation7 + $0xe4] ss:$8 sps:$4 sm:$0xff]  }
  0x4a   :  { %607 = vmatprep.subr.bf16.mxu1 %v992_v22  ;;  %629 = vmatprep.mubr.bf16.mxu1 %v870_v51  ;;  %v1043_v59 = vld [vmem:[#allocation7 + $0xd0] ss:$8 sps:$4 sm:$0xff]   ;;  %v1048_v61 = vld [vmem:[#allocation7 + $0x164] ss:$8 sps:$4 sm:$0xff]   ;;  %v1046_v62 = vld [vmem:[#allocation7 + $0x160] ss:$8 sps:$4 sm:$0xff]   ;;  %v821_v51 = vlaneseq }
  0x4b   :  { %v1049_v63 = vld [vmem:[#allocation7 + $0xe0] ss:$8 sps:$4 sm:$0xff]   ;;  %v1050_v1 = vld [vmem:[#allocation7 + $0xf4] ss:$8 sps:$4 sm:$0xff]   ;;  %v1052_v3 = vld [vmem:[#allocation7 + $0x170] ss:$8 sps:$4 sm:$0xff]  }
  0x4c   :  { %233 = vmatpush1.bf16.msra.mxu0 %v994_v23  ;;  %v1054_v2 = vld [vmem:[#allocation7 + $0x174] ss:$8 sps:$4 sm:$0xff]   ;;  %v1055_v4 = vld [vmem:[#allocation7 + $0xf0] ss:$8 sps:$4 sm:$0xff]   ;;  %v1060_v5 = vld [vmem:[#allocation7 + $0x184] ss:$8 sps:$4 sm:$0xff]  }
  0x4d   :  { %608 = vmatpush1.bf16.msra.mxu1 %v995_v24  ;;  %234 = vmatprep.subr.bf16.mxu0 %v996_v25  ;;  %v1063_v6 = vld [vmem:[#allocation7 + $0x284] ss:$8 sps:$4 sm:$0xff]   ;;  %v1058_v8 = vld [vmem:[#allocation7 + $0x180] ss:$8 sps:$4 sm:$0xff]   ;;  %v1276_v10 = vld [vmem:[#allocation2 + $0x8] sm:$0xff] }
  0x4e   :  { %609 = vmatprep.subr.bf16.mxu1 %v998_v26  ;;  %v1061_v9 = vld [vmem:[#allocation7 + $0x280] ss:$8 sps:$4 sm:$0xff]   ;;  %v1066_v11 = vld [vmem:[#allocation7 + $0x194] ss:$8 sps:$4 sm:$0xff]   ;;  %v872_v13 = vcombine.high %v1276_v10, %v1276_v10  ;;  %v1064_v14 = vld [vmem:[#allocation7 + $0x190] ss:$8 sps:$4 sm:$0xff]  }
  0x4f   :  { %v1069_v12 = vld [vmem:[#allocation7 + $0x294] ss:$8 sps:$4 sm:$0xff]   ;;  %v1067_v15 = vld [vmem:[#allocation7 + $0x290] ss:$8 sps:$4 sm:$0xff]   ;;  %v1072_v16 = vld [vmem:[#allocation7 + $0x1a4] ss:$8 sps:$4 sm:$0xff]  }
  0x50   :  { %235 = vmatpush1.bf16.msra.mxu0 %v1000_v27  ;;  %v1075_v17 = vld [vmem:[#allocation7 + $0x2a4] ss:$8 sps:$4 sm:$0xff]   ;;  %v1070_v18 = vld [vmem:[#allocation7 + $0x1a0] ss:$8 sps:$4 sm:$0xff]   ;;  %v1078_v20 = vld [vmem:[#allocation7 + $0x1b4] ss:$8 sps:$4 sm:$0xff]  }
  0x51   :  { %610 = vmatpush1.bf16.msra.mxu1 %v1001_v28  ;;  %236 = vmatprep.subr.bf16.mxu0 %v1002_v29  ;;  %v1073_v19 = vld [vmem:[#allocation7 + $0x2a0] ss:$8 sps:$4 sm:$0xff]   ;;  %v1081_v21 = vld [vmem:[#allocation7 + $0x2b4] ss:$8 sps:$4 sm:$0xff]   ;;  %v1076_v22 = vld [vmem:[#allocation7 + $0x1b0] ss:$8 sps:$4 sm:$0xff]  }
  0x52   :  { %611 = vmatprep.subr.bf16.mxu1 %v1004_v30  ;;  %v1079_v23 = vld [vmem:[#allocation7 + $0x2b0] ss:$8 sps:$4 sm:$0xff]   ;;  %v1084_v24 = vld [vmem:[#allocation7 + $0x1c4] ss:$8 sps:$4 sm:$0xff]   ;;  %v1082_v26 = vld [vmem:[#allocation7 + $0x1c0] ss:$8 sps:$4 sm:$0xff]  }
  0x53   :  { %v1087_v25 = vld [vmem:[#allocation7 + $0x2c4] ss:$8 sps:$4 sm:$0xff]   ;;  %v1090_v27 = vld [vmem:[#allocation7 + $0x1d4] ss:$8 sps:$4 sm:$0xff]   ;;  %v1088_v29 = vld [vmem:[#allocation7 + $0x1d0] ss:$8 sps:$4 sm:$0xff]  }
  0x54   :  { %237 = vmatpush1.bf16.msra.mxu0 %v1006_v31  ;;  %v1093_v28 = vld [vmem:[#allocation7 + $0x2d4] ss:$8 sps:$4 sm:$0xff]   ;;  %v1091_v30 = vld [vmem:[#allocation7 + $0x2d0] ss:$8 sps:$4 sm:$0xff]   ;;  %v1096_v31 = vld [vmem:[#allocation7 + $0x1e4] ss:$8 sps:$4 sm:$0xff]  }
  0x55   :  { %612 = vmatpush1.bf16.msra.mxu1 %v1007_v32  ;;  %638 = vmatprep.subr.bf16.mxu0 %v1012_v34  ;;  %v1099_v32 = vld [vmem:[#allocation7 + $0x2e4] ss:$8 sps:$4 sm:$0xff]   ;;  %v1097_v34 = vld [vmem:[#allocation7 + $0x2e0] ss:$8 sps:$4 sm:$0xff]  }
  0x56   :  { %613 = vmatprep.subr.bf16.mxu1 %v1008_v33  ;;  %v1094_v33 = vld [vmem:[#allocation7 + $0x1e0] ss:$8 sps:$4 sm:$0xff]  }
  0x57   :  { %255 = vmatmul.mubr.bf16.vlgmr.msra.gmra.mrb[0].mxu0 %v125_v35  ;;  %v1102_v35 = vld [vmem:[#allocation7 + $0x1f4] ss:$8 sps:$4 sm:$0xff]  }
  0x58   :  { %639 = vmatpush1.bf16.msra.mxu0 %v1010_v36  ;;  %670 = vmatprep.mubr.bf16.mxu0 %v872_v13  ;;  %v1105_v36 = vld [vmem:[#allocation7 + $0x2f4] ss:$8 sps:$4 sm:$0xff]  }
  0x59   :  { %614 = vmatpush1.bf16.msra.mxu1 %v1013_v37  ;;  %640 = vmatprep.subr.bf16.mxu0 %v1018_v39  ;;  %v1100_v37 = vld [vmem:[#allocation7 + $0x1f0] ss:$8 sps:$4 sm:$0xff]   ;;  %v871_v39 = vcombine.low %v1276_v10, %v1276_v10 }
  0x5a   :  { %615 = vmatprep.subr.bf16.mxu1 %v1014_v38  ;;  %v1103_v38 = vld [vmem:[#allocation7 + $0x2f0] ss:$8 sps:$4 sm:$0xff]  }
  0x5c   :  { %641 = vmatpush1.bf16.msra.mxu0 %v1016_v40  ;;  %v679_v40 = vld [vmem:[%s1303_s2] sm:$0xf]  ;;  %s1208_s2 = smov [#allocation8]  }
  0x5d   :  { %616 = vmatpush1.bf16.msra.mxu1 %v1019_v41  ;;  %642 = vmatprep.subr.bf16.mxu0 %v1024_v43  ;;  %s843_s7 = sshll.u32 %s1208_s2, 4  ;;  %s844_s7 = int_to_ptr.vmem [resolvable:$true] %s843_s7 }
  0x5e   :  { %617 = vmatprep.subr.bf16.mxu1 %v1020_v42  ;;  %p1179_p11 = scmp.lt.s32.totalorder %s844_s7, %s844_s7 }
  0x60   :  { %643 = vmatpush1.bf16.msra.mxu0 %v1022_v44 }
  0x61   :  { %618 = vmatpush1.bf16.msra.mxu1 %v1025_v45  ;;  %644 = vmatprep.subr.bf16.mxu0 %v1030_v47 }
  0x62   :  { %619 = vmatprep.subr.bf16.mxu1 %v1026_v46 }
  0x64   :  { %645 = vmatpush1.bf16.msra.mxu0 %v1028_v49 }
  0x65   :  { %620 = vmatpush1.bf16.msra.mxu1 %v1031_v50  ;;  %646 = vmatprep.subr.bf16.mxu0 %v1036_v53 }
  0x66   :  { %621 = vmatprep.subr.bf16.mxu1 %v1032_v52  ;;  %v822_v52 = vshrl.u32 %v821_v51, 7 }
  0x68   :  { %647 = vmatpush1.bf16.msra.mxu0 %v1034_v54  ;;  %v823_v53 = vsub.s32 0, %v822_v52  ;;  %v819_v54 = vld [vmem:[%s1305_s4] sm:$0x3]  ;;  %s1174_s4 = scalar_lea.vmem %s844_s7, 256 }
  0x69   :  { %622 = vmatpush1.bf16.msra.mxu1 %v1037_v55  ;;  %648 = vmatprep.subr.bf16.mxu0 %v1042_v57  ;;  %v827_v55 = vsub.s32 1, %v822_v52  ;;  %p1175_p10 = scmp.ne.s32.totalorder %s844_s7, %s1174_s4  ;;  %p1180_p12 = scmp.lt.s32.totalorder %s1174_s4, %s1174_s4 }
  0x6a   :  { %623 = vmatprep.subr.bf16.mxu1 %v1038_v56 }
  0x6b   :  { %p1181_p13 = por %p1180_p12, %p1179_p11 }
  0x6c   :  { %649 = vmatpush1.bf16.msra.mxu0 %v1040_v58 }
  0x6d   :  { %624 = vmatpush1.bf16.msra.mxu1 %v1043_v59  ;;  %650 = vmatprep.subr.bf16.mxu0 %v1048_v61  ;;  %v824_v59 = vrot.slane %v819_v54, %v823_v53  ;;  %p1182_p0 = pnand %p1181_p13, %p1175_p10 }
  0x6e   :  { %625 = vmatprep.subr.bf16.mxu1 %v1044_v60 }
  0x70   :  { %651 = vmatpush1.bf16.msra.mxu0 %v1046_v62 }
  0x71   :  { %626 = vmatpush1.bf16.msra.mxu1 %v1049_v63  ;;  %652 = vmatprep.subr.bf16.mxu0 %v1054_v2  ;;  %v828_v63 = vrot.slane %v819_v54, %v827_v55 }
  0x72   :  { %627 = vmatprep.subr.bf16.mxu1 %v1050_v1 }
  0x74   :  { %653 = vmatpush1.bf16.msra.mxu0 %v1052_v3 }
  0x75   :  { %628 = vmatpush1.bf16.msra.mxu1 %v1055_v4  ;;  %654 = vmatprep.subr.bf16.mxu0 %v1060_v5 }
  0x76   :  { %776 = vmatprep.subr.bf16.mxu1 %v1063_v6 }
  0x78   :  { %630 = vmatmul.mubr.bf16.vlgmr.msra.gmra.mrb[0].mxu1 %v869_v7  ;;  %655 = vmatpush1.bf16.msra.mxu0 %v1058_v8 }
  0x79   :  { %777 = vmatpush1.bf16.msra.mxu1 %v1061_v9  ;;  %656 = vmatprep.subr.bf16.mxu0 %v1066_v11 }
  0x7a   :  { %778 = vmatprep.subr.bf16.mxu1 %v1069_v12  ;;  %808 = vmatprep.mubr.bf16.mxu1 %v1207_v0  ;;  %v1085_v0 = vld [vmem:[#allocation7 + $0x2c0] ss:$8 sps:$4 sm:$0xff]  }
  0x7c   :  { %657 = vmatpush1.bf16.msra.mxu0 %v1064_v14 }
  0x7d   :  { %779 = vmatpush1.bf16.msra.mxu1 %v1067_v15  ;;  %658 = vmatprep.subr.bf16.mxu0 %v1072_v16 }
  0x7e   :  { %780 = vmatprep.subr.bf16.mxu1 %v1075_v17 }
  0x80   :  { %659 = vmatpush1.bf16.msra.mxu0 %v1070_v18 }
  0x81   :  { %781 = vmatpush1.bf16.msra.mxu1 %v1073_v19  ;;  %660 = vmatprep.subr.bf16.mxu0 %v1078_v20 }
  0x82   :  { %782 = vmatprep.subr.bf16.mxu1 %v1081_v21 }
  0x84   :  { %661 = vmatpush1.bf16.msra.mxu0 %v1076_v22 }
  0x85   :  { %783 = vmatpush1.bf16.msra.mxu1 %v1079_v23  ;;  %662 = vmatprep.subr.bf16.mxu0 %v1084_v24 }
  0x86   :  { %784 = vmatprep.subr.bf16.mxu1 %v1087_v25 }
  0x88   :  { %663 = vmatpush1.bf16.msra.mxu0 %v1082_v26 }
  0x89   :  { %785 = vmatpush1.bf16.msra.mxu1 %v1085_v0  ;;  %664 = vmatprep.subr.bf16.mxu0 %v1090_v27 }
  0x8a   :  { %786 = vmatprep.subr.bf16.mxu1 %v1093_v28 }
  0x8c   :  { %665 = vmatpush1.bf16.msra.mxu0 %v1088_v29 }
  0x8d   :  { %787 = vmatpush1.bf16.msra.mxu1 %v1091_v30  ;;  %666 = vmatprep.subr.bf16.mxu0 %v1096_v31 }
  0x8e   :  { %788 = vmatprep.subr.bf16.mxu1 %v1099_v32 }
  0x90   :  { %667 = vmatpush1.bf16.msra.mxu0 %v1094_v33 }
  0x91   :  { %789 = vmatpush1.bf16.msra.mxu1 %v1097_v34  ;;  %668 = vmatprep.subr.bf16.mxu0 %v1102_v35 }
  0x92   :  { %790 = vmatprep.subr.bf16.mxu1 %v1105_v36 }
  0x94   :  { %669 = vmatpush1.bf16.msra.mxu0 %v1100_v37 }
  0x95   :  { %791 = vmatpush1.bf16.msra.mxu1 %v1103_v38 }
  0x97   :  { %671 = vmatmul.mubr.bf16.vlgmr.msra.gmra.mrb[4].mxu0 %v871_v39 }
  0x98   :  { %809 = vmatmul.mubr.bf16.vlgmr.msra.gmra.mrb[4].mxu1 %v679_v40 }
 0x12a   :  { %v256_v41 = vpop.f32.mrb[0].mxu0 }
 0x12b   :  { %v258_v42 = vpop.f32.mrb[1].mxu0 }
 0x12c   :  { %v260_v43 = vpop.f32.mrb[2].mxu0 }
 0x12d   :  { %v261_v44 = vpop.f32.mrb[3].mxu0 }
 0x14b   :  { %v631_v45 = vpop.f32.mrb[0].mxu1 }
 0x14c   :  { %v632_v46 = vadd.f32 %v631_v45, %v256_v41  ;;  %v633_v47 = vpop.f32.mrb[1].mxu1 }
 0x14d   :  { %v634_v48 = vadd.f32 %v633_v47, %v258_v42  ;;  %v635_v49 = vpop.f32.mrb[2].mxu1 }
 0x14e   :  { %v636_v50 = vpop.f32.mrb[3].mxu1 }
 0x16a   :  { %v672_v56 = vpop.f32.mrb[4].mxu0 }
 0x16b   :  { %v810_v57 = vpop.f32.mrb[4].mxu1  ;;  %v673_v58 = vadd.f32 %v672_v56, %v632_v46  ;;  %v674_v60 = vpop.f32.mrb[5].mxu0 }
 0x16c   :  { %v812_v61 = vpop.f32.mrb[5].mxu1  ;;  %v675_v62 = vadd.f32 %v674_v60, %v634_v48  ;;  %v676_v1 = vpop.f32.mrb[6].mxu0 }
 0x16d   :  { %v814_v2 = vpop.f32.mrb[6].mxu1  ;;  %v817_v3 = vadd.f32 %v810_v57, %v673_v58  ;;  %v677_v4 = vpop.f32.mrb[7].mxu0 }
 0x16e   :  { %v815_v5 = vpop.f32.mrb[7].mxu1  ;;  %v818_v6 = vadd.f32 %v812_v61, %v675_v62 }
 0x16f   :  { %v831_v7 = vadd.f32 %v824_v59, %v817_v3 }
 0x170   :  { %v832_v8 = vadd.f32 %v828_v63, %v818_v6 }
 0x171   :  { %v833_v9 = vmax.f32 %v831_v7, 0.0 }
 0x172   :  { %v834_v10 = vmax.f32 %v832_v8, 0.0 }
 0x173   :  { %835 = vst [vmem:[#allocation8] sm:$0xff] %v833_v9 }
 0x174   :  { %836 = vst [vmem:[#allocation8 + $0x8] sm:$0xff] %v834_v10 }
 0x175   :  { %1185 = shalt.err (!%p1182_p0)
}
 0x176   :  { %s1186_s10 = scalar_lea.hbm %s1306_s5, 256 }
 0x177   :  { %p1187_p1 = scmp.ne.s32.totalorder %s1306_s5, %s1186_s10  ;;  %p1190_p2 = scmp.lt.u32.totalorder %s1186_s10, %s1306_s5 }
 0x179   :  { %p1192_p3 = pnand %p1190_p2, %p1187_p1 }
 0x17b   :  { %1195 = shalt.err (!%p1192_p3)
}
 0x17c   :  { %846 = dma.vmem_to_hbm [thread:$0]  %s844_s7, 256, %s1306_s5, [#allocation4]  }
 0x17d   :  { %1200 = dma.done.wait [#allocation4], 256  }
 0x17e   :  { %1201 = vsyncadd [#allocation4], 4294967040 }
 0x17f   :  { %850 = vsyncpa [#allocation3], 1 }
 0x180   :  { %851 = vsyncpa [#allocation6], 1 }
 0x181   :  { %852 = vsyncpa [#allocation4], 1 }

</bundles_post_ra>
